<compile_context>
chip_gen: v7x
topology: tpu7x:2x2x1
jax: 0.10.0
libtpu: 0.0.40
codegen_flags: <defaults>
</compile_context>

<pallas_src>
import functools

import jax
import jax.numpy as jnp
from jax.experimental import pallas as pl
from jax.experimental.pallas import tpu as pltpu

NEG_SLOPE = 0.1
BN_EPS = 1e-5
LANE = 128
VMEM_LIMIT = 32 * 1024 * 1024   # re-derive per generation when enlarging tiles


def _round_up(x, m):
    return (x + m - 1) // m * m


def _cdiv(a, b):
    return -(-a // b)


def _choose_tm(m):
    if m >= 1024:
        return 512                              # ~85% of HBM roofline territory
    if m >= 16:
        return _round_up(_cdiv(m, 2), 8)        # >=2 grid steps (both v7x TCs)
    return _round_up(m, 8)


def _choose_tn(cp):
    # 256-wide Cout tile fills the 256x256 MXU on v6e/v7x; 128 otherwise
    # (already full width on v5e's 128x128 MXUs).
    return 256 if cp % 256 == 0 else 128


# ----------------------------------------------------------------------------
# Pallas kernels
# ----------------------------------------------------------------------------
def _matmul_affine_act_kernel(x_ref, w_ref, scale_ref, shift_ref, o_ref, *,
                              negative_slope, apply_act):
    # 1x1 conv == matmul over channels (bf16 MXU, f32 accumulation), fused with
    # the folded BatchNorm/bias affine and LeakyReLU.
    y = jnp.dot(x_ref[...], w_ref[...], preferred_element_type=jnp.float32)
    y = y * scale_ref[...] + shift_ref[...]
    if apply_act:
        y = jnp.where(y > 0, y, negative_slope * y)
    o_ref[...] = y.astype(o_ref.dtype)


def _conv3x3_tail(make_mid, w_ref, scale_ref, shift_ref, o_ref, xp_ref, *,
                  w_real, negative_slope, apply_act):
    """3x3 / stride 1 / pad 1 conv on the (fused or copied) mid activation.

    xp_ref: VMEM scratch (3, H+2, Wp, Cmid) f32 holding the three dx-shifted,
    zero-haloed copies of the mid activation (built once per image at co==0 so
    all shift / relayout work is hoisted out of the per-Cout-tile matmul loop).
    """
    co = pl.program_id(1)
    _, hp2, wp, cin = xp_ref.shape
    h = hp2 - 2
    tc = o_ref.shape[-1]

    @pl.when(co == 0)
    def _():
        mid = make_mid()                                    # f32 (H, W, Cmid)
        xp_ref[...] = jnp.zeros_like(xp_ref)                # zero halo / W pad
        xp_ref[1, 1:h + 1, :w_real, :] = mid                # dx == 1 (center)
        center = xp_ref[1]                                  # (H+2, Wp, Cmid)
        zcol = jnp.zeros((hp2, 1, cin), jnp.float32)
        # dx == 0 needs x[w-1]; dx == 2 needs x[w+1]; zero columns give the
        # horizontal conv boundary for free.
        xp_ref[0] = jnp.concatenate([zcol, center[:, :wp - 1, :]], axis=1)
        xp_ref[2] = jnp.concatenate([center[:, 1:, :], zcol], axis=1)

    acc = jnp.zeros((h * wp, tc), jnp.float32)
    for dy in range(3):
        for dx in range(3):
            # Leading-dim slices only (free); Wp % 8 == 0 so the reshape is the
            # identity layout.  bf16 operands feed the MXU, f32 accumulation.
            slab = xp_ref[dx, dy:dy + h].reshape(h * wp, cin)
            acc = acc + jnp.dot(slab.astype(jnp.bfloat16), w_ref[dy, dx],
                                preferred_element_type=jnp.float32)
    y = acc * scale_ref[...] + shift_ref[...]
    if apply_act:
        y = jnp.where(y > 0, y, negative_slope * y)
    o_ref[0] = y.reshape(h, wp, tc).astype(o_ref.dtype)


def _conv3x3_kernel(x_ref, w_ref, scale_ref, shift_ref, o_ref, xp_ref, *,
                    negative_slope, apply_act):
    w_real = x_ref.shape[2]

    def make_mid():
        return x_ref[0].astype(jnp.float32)

    _conv3x3_tail(make_mid, w_ref, scale_ref, shift_ref, o_ref, xp_ref,
                  w_real=w_real, negative_slope=negative_slope,
                  apply_act=apply_act)


def _dbl1x1_conv3x3_kernel(x_ref, pw_ref, pscale_ref, pshift_ref,
                           w_ref, scale_ref, shift_ref, o_ref, xp_ref, *,
                           negative_slope, apply_act):
    # Fused DBL(1x1) -> DBL(3x3): the 1x1 + BN + LeakyReLU runs once per image
    # (co == 0) and writes its activation straight into the VMEM scratch.
    _, h, w_real, cin0 = x_ref.shape
    cmid = pw_ref.shape[1]

    def make_mid():
        # f32 reshape (layout-safe), bf16 operands for the MXU.
        x2 = x_ref[0].astype(jnp.float32).reshape(h * w_real, cin0)
        mid = jnp.dot(x2.astype(jnp.bfloat16), pw_ref[...],
                      preferred_element_type=jnp.float32)
        mid = mid * pscale_ref[...] + pshift_ref[...]
        mid = jnp.where(mid > 0, mid, negative_slope * mid)
        return mid.reshape(h, w_real, cmid)

    _conv3x3_tail(make_mid, w_ref, scale_ref, shift_ref, o_ref, xp_ref,
                  w_real=w_real, negative_slope=negative_slope,
                  apply_act=apply_act)


# ----------------------------------------------------------------------------
# pallas_call wrappers
# ----------------------------------------------------------------------------
def conv1x1(x_nhwc, p, apply_act=True, out_dtype=jnp.bfloat16):
    """1x1 conv (stride 1) + folded BN/bias affine + optional LeakyReLU."""
    n, h, w, cin = x_nhwc.shape
    wgt, scale, shift = p["w"], p["scale"], p["shift"]
    assert wgt.shape[0] == cin
    cout, cp = p["cout"], wgt.shape[1]
    m = n * h * w
    tm = _choose_tm(m)
    mp = _round_up(m, tm)
    tn = _choose_tn(cp)

    x2 = x_nhwc.astype(jnp.bfloat16).reshape(m, cin)
    if mp != m:
        x2 = jnp.pad(x2, ((0, mp - m), (0, 0)))

    kernel = functools.partial(_matmul_affine_act_kernel,
                               negative_slope=NEG_SLOPE, apply_act=apply_act)
    out = pl.pallas_call(
        kernel,
        out_shape=jax.ShapeDtypeStruct((mp, cp), out_dtype),
        grid=(mp // tm, cp // tn),
        in_specs=[
            pl.BlockSpec((tm, cin), lambda i, j: (i, 0)),
            pl.BlockSpec((cin, tn), lambda i, j: (0, j)),
            pl.BlockSpec((1, tn), lambda i, j: (0, j)),
            pl.BlockSpec((1, tn), lambda i, j: (0, j)),
        ],
        out_specs=pl.BlockSpec((tm, tn), lambda i, j: (i, j)),
        compiler_params=pltpu.CompilerParams(
            dimension_semantics=("parallel", "parallel"),
            vmem_limit_bytes=VMEM_LIMIT),
    )(x2, wgt, scale, shift)
    return out[:m, :cout].reshape(n, h, w, cout)


def _conv3x3_call(kernel, operands, n, h, w, cin_mid, cp, cout, out_dtype,
                  extra_in_specs):
    wp = _round_up(w, 8)
    tn = _choose_tn(cp)
    in_specs = (
        [pl.BlockSpec((1, h, w, operands[0].shape[-1]),
                      lambda nn, co: (nn, 0, 0, 0))]
        + extra_in_specs
        + [
            pl.BlockSpec((3, 3, cin_mid, tn), lambda nn, co: (0, 0, 0, co)),
            pl.BlockSpec((1, tn), lambda nn, co: (0, co)),
            pl.BlockSpec((1, tn), lambda nn, co: (0, co)),
        ])
    out = pl.pallas_call(
        kernel,
        out_shape=jax.ShapeDtypeStruct((n, h, wp, cp), out_dtype),
        grid=(n, cp // tn),
        in_specs=in_specs,
        out_specs=pl.BlockSpec((1, h, wp, tn), lambda nn, co: (nn, 0, 0, co)),
        scratch_shapes=[pltpu.VMEM((3, h + 2, wp, cin_mid), jnp.float32)],
        compiler_params=pltpu.CompilerParams(
            # co stays sequential: the scratch built at co==0 is reused.
            dimension_semantics=("parallel", "arbitrary"),
            vmem_limit_bytes=VMEM_LIMIT),
    )(*operands)
    return out[:, :, :w, :cout]
    # TODO(synk): at production channel widths (Cin=512+) also grid over Cin
    # with a VMEM accumulator + pl.when init/finalize.


def conv3x3(x_nhwc, p, apply_act=True, out_dtype=jnp.bfloat16):
    """3x3 conv (stride 1, pad 1) + folded BN/bias affine + optional LeakyReLU."""
    n, h, w, cin = x_nhwc.shape
    wgt = p["w"]
    assert wgt.shape[2] == cin
    kernel = functools.partial(_conv3x3_kernel, negative_slope=NEG_SLOPE,
                               apply_act=apply_act)
    operands = (x_nhwc.astype(jnp.bfloat16), wgt, p["scale"], p["shift"])
    return _conv3x3_call(kernel, operands, n, h, w, cin, wgt.shape[3],
                         p["cout"], out_dtype, extra_in_specs=[])


def dbl_pair_fused(x_nhwc, p1, p3, out_dtype=jnp.bfloat16):
    """Fused DBL(1x1) -> DBL(3x3); the mid activation never touches HBM."""
    n, h, w, cin0 = x_nhwc.shape
    cmid = p1["cout"]
    assert p1["w"].shape[0] == cin0 and p3["w"].shape[2] == cmid
    pw = p1["w"][:, :cmid]              # drop lane padding: mid stays in VMEM
    pscale = p1["scale"][:, :cmid]
    pshift = p1["shift"][:, :cmid]
    w3 = p3["w"]
    kernel = functools.partial(_dbl1x1_conv3x3_kernel,
                               negative_slope=NEG_SLOPE, apply_act=True)
    operands = (x_nhwc.astype(jnp.bfloat16), pw, pscale, pshift,
                w3, p3["scale"], p3["shift"])
    extra = [
        pl.BlockSpec((cin0, cmid), lambda nn, co: (0, 0)),
        pl.BlockSpec((1, cmid), lambda nn, co: (0, 0)),
        pl.BlockSpec((1, cmid), lambda nn, co: (0, 0)),
    ]
    return _conv3x3_call(kernel, operands, n, h, w, cmid, w3.shape[3],
                         p3["cout"], out_dtype, extra_in_specs=extra)


# ----------------------------------------------------------------------------
# Parameter construction (deterministic, synthetic; Cout lane-padded, bf16)
# ----------------------------------------------------------------------------
def _pad_cout(w, scale, shift, cout):
    cp = _round_up(cout, LANE)
    pad = cp - cout
    if pad:
        w = jnp.pad(w, [(0, 0)] * (w.ndim - 1) + [(0, pad)])
        scale = jnp.pad(scale, (0, pad))
        shift = jnp.pad(shift, (0, pad))
    return w, scale.reshape(1, cp), shift.reshape(1, cp)


def _dbl_params(key, ksize, cin, cout):
    k1, k2, k3, k4, k5, k6 = jax.random.split(key, 6)
    fan_in = ksize * ksize * cin
    w = jax.random.normal(k1, (ksize, ksize, cin, cout), jnp.float32) / jnp.sqrt(fan_in)
    bias = 0.1 * jax.random.normal(k6, (cout,), jnp.float32)
    # BatchNorm2d (eval semantics), folded with conv bias.
    gamma = 1.0 + 0.1 * jax.random.normal(k2, (cout,), jnp.float32)
    beta = 0.1 * jax.random.normal(k3, (cout,), jnp.float32)
    mean = 0.1 * jax.random.normal(k4, (cout,), jnp.float32)
    var = 1.0 + 0.1 * jax.random.uniform(k5, (cout,), jnp.float32)
    scale = gamma / jnp.sqrt(var + BN_EPS)
    shift = beta - mean * scale + scale * bias
    if ksize == 1:
        w = w.reshape(cin, cout)
    w, scale, shift = _pad_cout(w, scale, shift, cout)
    return {"k": ksize, "cout": cout, "w": w.astype(jnp.bfloat16),
            "scale": scale, "shift": shift}


def _conv_params(key, ksize, cin, cout):
    k1, k2 = jax.random.split(key)
    fan_in = ksize * ksize * cin
    w = jax.random.normal(k1, (ksize, ksize, cin, cout), jnp.float32) / jnp.sqrt(fan_in)
    b = 0.1 * jax.random.normal(k2, (cout,), jnp.float32)
    if ksize == 1:
        w = w.reshape(cin, cout)
    w, scale, shift = _pad_cout(w, jnp.ones((cout,), jnp.float32), b, cout)
    return {"k": ksize, "cout": cout, "w": w.astype(jnp.bfloat16),
            "scale": scale, "shift": shift}


def init_yolo_head_params(key, s13c, s26c, s52c, num_classes):
    det_c = (num_classes + 5) * 3
    specs = [
        ("dbl_1_1", 1, s13c,               s13c // 2, True),
        ("dbl_1_2", 3, s13c // 2,          s13c,      True),
        ("dbl_1_3", 1, s13c,               s13c // 2, True),
        ("dbl_1_4", 3, s13c // 2,          s13c,      True),
        ("dbl_1_5", 1, s13c,               s13c // 2, True),
        ("dbl_s1",  3, s13c // 2,          s13c,      True),
        ("conv_s1", 1, s13c,               det_c,     False),
        ("dbl_m_1", 1, s13c // 2,          s13c // 4, True),
        ("dbl_2_1", 1, s13c // 4 + s26c,   s13c // 4, True),
        ("dbl_2_2", 3, s13c // 4,          s13c // 2, True),
        ("dbl_2_3", 1, s13c // 2,          s13c // 4, True),
        ("dbl_2_4", 3, s13c // 4,          s13c // 2, True),
        ("dbl_2_5", 1, s13c // 2,          s13c // 4, True),
        ("dbl_s2",  3, s13c // 4,          s13c // 2, True),
        ("conv_s2", 3, s13c // 2,          det_c,     False),
        ("dbl_m_2", 1, s13c // 4,          s13c // 8, True),
        ("dbl_3_1", 1, s13c // 8 + s52c,   s13c // 8, True),
        ("dbl_3_2", 3, s13c // 8,          s13c // 4, True),
        ("dbl_3_3", 1, s13c // 4,          s13c // 8, True),
        ("dbl_3_4", 3, s13c // 8,          s13c // 4, True),
        ("dbl_3_5", 1, s13c // 4,          s13c // 8, True),
        ("dbl_s3",  3, s13c // 8,          s13c // 4, True),
        ("conv_s3", 1, s13c // 4,          det_c,     False),
    ]
    params = {}
    keys = jax.random.split(key, len(specs))
    for k, (name, ks, cin, cout, is_dbl) in zip(keys, specs):
        params[name] = (_dbl_params if is_dbl else _conv_params)(k, ks, cin, cout)
    return params


# ----------------------------------------------------------------------------
# Forward pass (glue in plain JAX, hot paths in Pallas)
# ----------------------------------------------------------------------------
def upsample2x(x):  # nn.Upsample(scale_factor=2), nearest
    return jnp.repeat(jnp.repeat(x, 2, axis=1), 2, axis=2)


def _det_reshape(s, num_classes):
    # NHWC (N,H,W,3*(nc+5)) -> (N,3,H,W,nc+5); matches the PyTorch
    # reshape(N,3,nc+5,H,W).permute(0,1,3,4,2) on NCHW.
    n, h, w, _ = s.shape
    s = s.reshape(n, h, w, 3, num_classes + 5)
    return jnp.transpose(s, (0, 3, 1, 2, 4))


def yolo_head(params, rc13, rc26, rc52, num_classes):
    x = dbl_pair_fused(rc13, params["dbl_1_1"], params["dbl_1_2"])
    x = dbl_pair_fused(x, params["dbl_1_3"], params["dbl_1_4"])
    x = conv1x1(x, params["dbl_1_5"])
    s13 = conv3x3(x, params["dbl_s1"])
    s13 = conv1x1(s13, params["conv_s1"], apply_act=False, out_dtype=jnp.float32)
    s13 = _det_reshape(s13, num_classes)

    x = conv1x1(x, params["dbl_m_1"])
    x = upsample2x(x)
    x = jnp.concatenate([x, rc26.astype(x.dtype)], axis=-1)   # torch.cat dim=1
    x = dbl_pair_fused(x, params["dbl_2_1"], params["dbl_2_2"])
    x = dbl_pair_fused(x, params["dbl_2_3"], params["dbl_2_4"])
    x = conv1x1(x, params["dbl_2_5"])
    s26 = conv3x3(x, params["dbl_s2"])
    s26 = conv3x3(s26, params["conv_s2"], apply_act=False, out_dtype=jnp.float32)
    s26 = _det_reshape(s26, num_classes)

    x = conv1x1(x, params["dbl_m_2"])
    x = upsample2x(x)
    x = jnp.concatenate([x, rc52.astype(x.dtype)], axis=-1)
    x = dbl_pair_fused(x, params["dbl_3_1"], params["dbl_3_2"])
    x = dbl_pair_fused(x, params["dbl_3_3"], params["dbl_3_4"])
    x = conv1x1(x, params["dbl_3_5"])
    s52 = conv3x3(x, params["dbl_s3"])
    s52 = conv1x1(s52, params["conv_s3"], apply_act=False, out_dtype=jnp.float32)
    s52 = _det_reshape(s52, num_classes)

    return s13, s26, s52


# TODO(synk): the real YoloV3 encoder (Darknet-53 cfg + pretrained .conv.74 /
# MobileNetV3) cannot be reproduced in-script; it is stubbed with deterministic
# strided average pooling + Pallas 1x1 channel projections that produce the
# three branch feature maps rc_13 / rc_26 / rc_52.
def make_encoder_params(key, in_c, s13c, s26c, s52c):
    k1, k2, k3 = jax.random.split(key, 3)
    return {
        "p13": _conv_params(k1, 1, in_c, s13c),
        "p26": _conv_params(k2, 1, in_c, s26c),
        "p52": _conv_params(k3, 1, in_c, s52c),
    }


def _avgpool(x, s):
    if s == 1:
        return x
    n, h, w, c = x.shape
    return x.reshape(n, h // s, s, w // s, s, c).mean(axis=(2, 4))


def encoder_stub(params, x_nhwc):
    rc13 = conv1x1(_avgpool(x_nhwc, 4), params["p13"])
    rc26 = conv1x1(_avgpool(x_nhwc, 2), params["p26"])
    rc52 = conv1x1(x_nhwc, params["p52"])
    return rc13, rc26, rc52


# ----------------------------------------------------------------------------
if __name__ == "__main__":
    N, IN_C, HIN, WIN = 2, 3, 16, 16          # input x (NCHW)
    S13C, S26C, S52C = 64, 32, 16             # encoder branch_channels
    NUM_CLASSES = 3

    key = jax.random.PRNGKey(0)
    kx, kenc, khead = jax.random.split(key, 3)

    x_nchw = jax.random.normal(kx, (N, IN_C, HIN, WIN), jnp.float32)
    x_nhwc = jnp.transpose(x_nchw, (0, 2, 3, 1))   # NCHW -> NHWC at boundary

    enc_params = make_encoder_params(kenc, IN_C, S13C, S26C, S52C)
    head_params = init_yolo_head_params(khead, S13C, S26C, S52C, NUM_CLASSES)

    rc13, rc26, rc52 = encoder_stub(enc_params, x_nhwc)
    s13, s26, s52 = yolo_head(head_params, rc13, rc26, rc52, NUM_CLASSES)
    jax.block_until_ready((s13, s26, s52))

    assert s13.shape == (N, 3, HIN // 4, WIN // 4, NUM_CLASSES + 5)
    assert s26.shape == (N, 3, HIN // 2, WIN // 2, NUM_CLASSES + 5)
    assert s52.shape == (N, 3, HIN, WIN, NUM_CLASSES + 5)
    assert all(bool(jnp.all(jnp.isfinite(s))) for s in (s13, s26, s52))

    print("KERNEL_OK")
</pallas_src>

<mosaic_0001>
module attributes {stable_mosaic.version = 11 : i64} {
  func.func @_matmul_affine_act_kernel(%arg0: i32, %arg1: i32, %arg2: memref<16x3xbf16, #tpu.memory_space<vmem>>, %arg3: memref<3x128xbf16, #tpu.memory_space<vmem>>, %arg4: memref<1x128xf32, #tpu.memory_space<vmem>>, %arg5: memref<1x128xf32, #tpu.memory_space<vmem>>, %arg6: memref<16x128xbf16, #tpu.memory_space<vmem>>) attributes {dimension_semantics = [#tpu.dimension_semantics<parallel>, #tpu.dimension_semantics<parallel>], iteration_bounds = array<i64: 2, 1>, scalar_prefetch = 0 : i64, scratch_operands = 0 : i64, tpu.core_type = #tpu.core_type<tc>, window_params = [{transform_indices = @transform_0, window_bounds = array<i64: 16, 3>}, {transform_indices = @transform_1, window_bounds = array<i64: 3, 128>}, {transform_indices = @transform_2, window_bounds = array<i64: 1, 128>}, {transform_indices = @transform_3, window_bounds = array<i64: 1, 128>}, {transform_indices = @transform_4, window_bounds = array<i64: 16, 128>}]} {
    %c0 = arith.constant 0 : index
    %c0_0 = arith.constant 0 : index
    %0 = vector.load %arg2[%c0, %c0_0] : memref<16x3xbf16, #tpu.memory_space<vmem>>, vector<16x3xbf16>
    %c0_1 = arith.constant 0 : index
    %c0_2 = arith.constant 0 : index
    %1 = vector.load %arg3[%c0_1, %c0_2] : memref<3x128xbf16, #tpu.memory_space<vmem>>, vector<3x128xbf16>
    %cst = arith.constant dense<0.000000e+00> : vector<16x128xf32>
    %2 = tpu.matmul %0, %1, %cst {dimension_numbers = #tpu.dot_dimension_numbers<[1], [0], [0], [1], [0, 0, 1, 1], [], []>} : vector<16x3xbf16>, vector<3x128xbf16>, vector<16x128xf32> -> vector<16x128xf32>
    %c0_3 = arith.constant 0 : index
    %c0_4 = arith.constant 0 : index
    %3 = vector.load %arg4[%c0_3, %c0_4] : memref<1x128xf32, #tpu.memory_space<vmem>>, vector<1x128xf32>
    %4 = vector.broadcast %3 : vector<1x128xf32> to vector<16x128xf32>
    %5 = arith.mulf %2, %4 : vector<16x128xf32>
    %c0_5 = arith.constant 0 : index
    %c0_6 = arith.constant 0 : index
    %6 = vector.load %arg5[%c0_5, %c0_6] : memref<1x128xf32, #tpu.memory_space<vmem>>, vector<1x128xf32>
    %7 = vector.broadcast %6 : vector<1x128xf32> to vector<16x128xf32>
    %8 = arith.addf %5, %7 : vector<16x128xf32>
    %cst_7 = arith.constant 0.000000e+00 : f32
    %9 = vector.broadcast %cst_7 : f32 to vector<16x128xf32>
    %10 = arith.cmpf ogt, %8, %9 : vector<16x128xf32>
    %cst_8 = arith.constant 1.000000e-01 : f32
    %11 = vector.broadcast %cst_8 : f32 to vector<16x128xf32>
    %12 = arith.mulf %11, %8 : vector<16x128xf32>
    %13 = arith.select %10, %8, %12 : vector<16x128xi1>, vector<16x128xf32>
    %14 = arith.truncf %13 : vector<16x128xf32> to vector<16x128xbf16>
    %c0_9 = arith.constant 0 : index
    %c0_10 = arith.constant 0 : index
    %15 = vector.load %arg6[%c0_9, %c0_10] : memref<16x128xbf16, #tpu.memory_space<vmem>>, vector<16x128xbf16>
    tpu.vector_store %arg6[%c0_9, %c0_10], %14 {strides = array<i32>} : memref<16x128xbf16, #tpu.memory_space<vmem>>, vector<16x128xbf16>,
    return
  }
  func.func @transform_0(%arg0: i32, %arg1: i32) -> (i32, i32) {
    %c0_i32 = arith.constant 0 : i32
    %c0_i32_0 = arith.constant 0 : i32
    return %arg0, %c0_i32 : i32, i32
  }
  func.func @transform_1(%arg0: i32, %arg1: i32) -> (i32, i32) {
    %c0_i32 = arith.constant 0 : i32
    %c0_i32_0 = arith.constant 0 : i32
    return %c0_i32, %arg1 : i32, i32
  }
  func.func @transform_2(%arg0: i32, %arg1: i32) -> (i32, i32) {
    %c0_i32 = arith.constant 0 : i32
    %c0_i32_0 = arith.constant 0 : i32
    return %c0_i32, %arg1 : i32, i32
  }
  func.func @transform_3(%arg0: i32, %arg1: i32) -> (i32, i32) {
    %c0_i32 = arith.constant 0 : i32
    %c0_i32_0 = arith.constant 0 : i32
    return %c0_i32, %arg1 : i32, i32
  }
  func.func @transform_4(%arg0: i32, %arg1: i32) -> (i32, i32) {
    %c0_i32 = arith.constant 0 : i32
    return %arg0, %arg1 : i32, i32
  }
}

</mosaic_0001>

<bundles_post_ra>
// kernel: tpu_custom_call.1
= control target key start
LH: loop header
LB: loop body
LE: loop exit
PB: predicated region body
PF: predicated region fallthrough
CT: control target
= control target key end

     0   :  { %9 = vsyncpa [#allocation3], 0  ;;  %s812_s0 = inlined_call_operand.vmem [shape: bf16[32,3], index: 0, kind: input, shape index: {}]   ;;  %s813_s1 = inlined_call_operand.vmem [shape: bf16[3,128], index: 1, kind: input, shape index: {}]   ;;  %s814_s2 = inlined_call_operand.vmem [shape: f32[1,128], index: 2, kind: input, shape index: {}]   ;;  %s815_s3 = inlined_call_operand.vmem [shape: f32[1,128], index: 3, kind: input, shape index: {}]   ;;  %s816_s4 = inlined_call_operand.hbm [shape: bf16[32,128], index: 4, kind: output, shape index: {}]  }
   0x1   :  { %11 = vsyncpa [#allocation3 + $0x1], 0  ;;  %s689_s15 = smov 0   ;;  %s691_s16 = smov 0  }
   0x2   :  { %s693_s17 = smov 0   ;;  %s695_s18 = smov 0  }
   0x3   :  { %s697_s19 = smov 0   ;;  %s699_s20 = smov 0  }
   0x4 LB: > { %s479_s21 = sadd.s32 4294967295, %s656_s20   ;;  %s480_s22 = sadd.s32 4294967294, %s656_s20   ;;  %s656_s20 = sphi %s699_s20, %s17_s20   ;;  %s652_s19 = sphi %s697_s19, %s823_s19   ;;  %s648_s18 = sphi %s695_s18, %s822_s18   ;;  %s644_s17 = sphi %s693_s17, %s821_s17   ;;  %s640_s16 = sphi %s691_s16, %s820_s16   ;;  %s636_s15 = sphi %s689_s15, %s819_s15  }
   0x5   : > { %s29_s23 = sadd.s32 1, %s652_s19  ;;  %s142_s24 = sadd.s32 1, %s644_s17 }
   0x6   : > { %p31_p0 = scmp.ge.s32.totalorder %s29_s23, 2  ;;  %p152_p1 = scmp.ne.s32.totalorder %s644_s17, %s640_s16 }
   0x7   : > { %p153_p2 = scmp.eq.s32.totalorder %s479_s21, 1  ;;  %p158_p3 = scmp.ne.s32.totalorder %s640_s16, %s636_s15 }
   0x8   : > { %s825_s23 = smov (%p31_p0, %s29_s23), 0  ;;  %p159_p5 = scmp.eq.s32.totalorder %s480_s22, 1 }
   0x9   : > { %p729_p4 = por %p153_p2, %p152_p1  ;;  %s137_s26 = ssub.s32 %s652_s19, %s825_s23 }
   0xa   : > { %p486_p6 = scmp.ge.s32.totalorder %s656_s20, 1  ;;  %p140_p7 = scmp.eq.s32.totalorder %s137_s26, 0 }
   0xb   : > { %p736_p8 = por %p159_p5, %p158_p3  ;;  %p205_p9 = scmp.lt.s32.totalorder %s656_s20, 3 }
   0xc   : > { %s742_s28 = scalar_select %p140_p7, %s644_s17, %s142_s24  }
   0xd   : > { %p206_p10 = pnand %p486_p6, %p205_p9 }
   0xe   : > { %v261_v0 = vld [vmem:[%s813_s1] sm:$0x3] (!%p206_p10)  ;;  %vm271_vm0 = vcmask (!%p206_p10), 1040384   ;;  %vm272_vm1 = vcmask (!%p206_p10), 1041408   ;;  %v658_v1 = vmov (!%p206_p10), 0.0   ;;  %v659_v2 = vmov (!%p206_p10), 65535  }
   0xf   : > { %209 = sbr.rel (%p206_p10) target bundleno = 264 (0x108), region = 36  ;;  %511 = vmatprep.subr.bf16.mxu0 (!%p206_p10), %v658_v1  ;;  %v273_v3 = vsel (!%p206_p10), %vm271_vm0, 4294967295, %v659_v2  ;;  %s488_s5 = sshll.u32 (!%p206_p10), %s648_s18, 1  ;;  %vm660_vm2 = vmmov (!%p206_p10), 0   ;;  %vm267_vm3 = vcmask (!%p206_p10), 23552  }
  0x10   : > { %v274_v4 = vsel (!%p206_p10), %vm272_vm1, %v273_v3, 0  ;;  %513 = vmatprep.mubr.msk.bf16.mxu0 (!%p206_p10), %vm660_vm2, %v658_v1  ;;  %p242_p11 = scmp.lt.s32.totalorder (!%p206_p10), %s488_s5, 3  ;;  %s238_s10 = sand.u32 (!%p206_p10), 1, %s640_s16   ;;  %v492_v7 = vld [vmem:[%s814_s2] ss:$0 sm:$0xff] (!%p206_p10) }
  0x11   : > { %v276_v5 = vand.u32 (!%p206_p10), %v274_v4, %v261_v0  ;;  %v493_v9 = vld [vmem:[%s815_s3] ss:$0 sm:$0xff] (!%p206_p10)  ;;  %s487_s21 = sshll.u32 (!%p206_p10), %s238_s10, 3  ;;  %s503_s22 = sshll.u32 (!%p206_p10), %s648_s18, 7 }
  0x12   : > { %s240_s24 = scalar_lea.vmem (!%p206_p10), [#allocation2], %s487_s21  ;;  %s661_s7 = smov (!%p206_p10), [#allocation2]  }
  0x13   : > { %512 = vmatpush3.bf16.msra.mxu0 (!%p206_p10), %v276_v5  ;;  %s368_s26 = sshll.u32 (!%p206_p10), %s240_s24, 4  ;;  %s582_s8 = sshll.u32 (!%p206_p10), %s661_s7, 4  ;;  %s764_s26 = int_to_ptr.vmem [resolvable:$true] %s368_s26  ;;  %s583_s8 = int_to_ptr.vmem [resolvable:$false] %s582_s8 }
  0x14   : > { %s578_s18 = scalar_lea.vmem (!%p206_p10), %s764_s26, 128  ;;  %p585_p1 = scmp.lt.s32.totalorder (!%p206_p10), %s764_s26, %s583_s8 }
  0x15   : > { %p579_p12 = scmp.ne.s32.totalorder (!%p206_p10), %s764_s26, %s578_s18 }
  0x16   : > { %s827_s5 = smov (!%p242_p11, %s488_s5), 3 }
  0x17   : > { %s489_s6 = sshll.u32 %s827_s5, 2  ;;  %s762_s5 = scalar_lea.hbm %s816_s4, %s503_s22 }
  0x18   : > { %s245_s9 = scalar_lea.vmem %s812_s0, %s489_s6  ;;  %s766_s6 = scalar_lea.sflag [#allocation3], %s238_s10 }
  0x19   : > { %v577_v6 = vld [vmem:[%s245_s9] sm:$0xff]   ;;  %p580_p13 = pnand %p579_p12, %p729_p4  ;;  %s584_s9 = scalar_lea.vmem %s583_s8, 256 }
  0x1a   : > { %514 = vmatmul.mubr.msk.bf16.vlgmr.msra.gmra.mrb[0].mxu0 %vm267_vm3, %v577_v6  ;;  %p586_p2 = scmp.lt.s32.totalorder %s584_s9, %s578_s18 }
  0x1b   : > { %p581_p0 = pneg %p580_p13 }
  0x1c   : > { %p587_p3 = por %p586_p2, %p585_p1 }
  0x1e   : > { %p588_p5 = pnand %p587_p3, %p581_p0 }
  0xed   : > { %v312_v8 = vpop.f32.mrb[0].mxu0 }
  0xee   : > { %v326_v10 = vmul.f32 %v492_v7, %v312_v8  ;;  %v515_v11 = vpop.f32.mrb[1].mxu0 }
  0xef   : > { %v315_v12 = vpop.f32.mrb[2].mxu0 }
  0xf0   : > { %v335_v13 = vadd.f32 %v493_v9, %v326_v10  ;;  %v327_v14 = vmul.f32 %v492_v7, %v315_v12  ;;  %v516_v15 = vpop.f32.mrb[3].mxu0 }
  0xf2   : > { %v339_v16 = vmul.f32 0.1, %v335_v13  ;;  %v336_v17 = vadd.f32 %v493_v9, %v327_v14  ;;  %vm337_vm4 = vcmp.gt.f32.partialorder %v335_v13, 0.0 }
  0xf4   : > { %vm338_vm5 = vcmp.gt.f32.partialorder %v336_v17, 0.0  ;;  %v340_v18 = vmul.f32 0.1, %v336_v17  ;;  %v341_v19 = vsel %vm337_vm4, %v335_v13, %v339_v16 }
  0xf6   : > { %v342_v20 = vsel %vm338_vm5, %v336_v17, %v340_v18 }
  0xf7   : > { %v507_v21 = vpack.c.bf16 %v342_v20, %v341_v19 }
  0xf9   : > { %508 = vst [vmem:[%s240_s24] sm:$0xff] %v507_v21  }
  0xfa   : > { %591 = shalt.err (!%p588_p5)
}
  0xfb   : > { %s592_s10 = scalar_lea.hbm %s762_s5, 128  ;;  %s596_s13 = scalar_lea.hbm %s816_s4, 256 }
  0xfc   : > { %p593_p6 = scmp.ne.s32.totalorder %s762_s5, %s592_s10  ;;  %p597_p10 = scmp.lt.u32.totalorder %s762_s5, %s816_s4 }
  0xfd   : > { %p598_p11 = scmp.lt.u32.totalorder %s596_s13, %s592_s10  ;;  %p600_p13 = scmp.lt.u32.totalorder %s592_s10, %s762_s5 }
  0xfe   : > { %p594_p7 = pnand %p593_p6, %p729_p4 }
  0xff   : > { %p599_p12 = por %p598_p11, %p597_p10 }
 0x100   : > { %p595_p9 = pneg %p594_p7 }
 0x101   : > { %p601_p0 = por %p600_p13, %p599_p12 }
 0x103   : > { %p602_p1 = pnand %p601_p0, %p595_p9 }
 0x105   : > { %605 = shalt.err (!%p602_p1)
}
 0x106   : > { %s662_s22 = smov 64   ;;  %s663_s24 = smov 4  }
 0x107   : > { %517 = dma.vmem_to_hbm [thread:$0]  (%p729_p4), %s764_s26, 128, %s762_s5, %s766_s6, %s662_s22, %s662_s22, %s663_s24  }
 0x108 PF: > { %p523_p2 = scmp.ge.s32.totalorder %s656_s20, 2  ;;  %s383_s29 = sand.u32 1, %s636_s15  }
 0x109   : > { %s384_s30 = scalar_lea.sflag [#allocation3], %s383_s29 }
 0x10a   : > { %p520_p3 = pnand %p523_p2, %p736_p8 }
 0x10c   : > { %631 = dma.done.wait (!%p520_p3), %s384_s30, 128  }
 0x10d   : > { %633 = vsyncadd (!%p520_p3), %s384_s30, 4294967168  ;;  %s17_s20 = sadd.s32 1, %s656_s20   ;;  %s819_s15 = smov %s640_s16 }
 0x10e   : > { %p14_p5 = scmp.ge.s32.totalorder %s17_s20, 4   ;;  %s820_s16 = smov %s644_s17 }
 0x10f   : > { %s821_s17 = smov %s742_s28  ;;  %s822_s18 = smov %s652_s19 }
 0x110   : > { %s823_s19 = smov %s825_s23  ;;  %16 = sbr.rel (!%p14_p5) target bundleno = 4 (0x4), region = 80 }
 0x117   :  { %389 = vsyncpa [#allocation3], 1 }
 0x118   :  { %391 = vsyncpa [#allocation3 + $0x1], 1 }

</bundles_post_ra>
